<compile_context>
chip_gen: v7x
topology: tpu7x:2x2x1
jax: 0.10.0
libtpu: 0.0.40
codegen_flags: <defaults>
</compile_context>

<pallas_src>
import math

import jax
import jax.numpy as jnp
from jax.experimental import pallas as pl
from jax.experimental.pallas import tpu as pltpu


def _round_up(x, m):
    return (x + m - 1) // m * m


# ------------------------------ Pallas kernel ------------------------------

def _pe3d_kernel(pos_ref, f_ref, ws_ref, wc_ref, b_ref, o_ref,
                 sin_scr, cos_scr):
    """One (row-tile i, weight-column-tile j) step of the fused encoder.

    pos_ref : [TM, 3]   f32   (x, y, z) per row
    f_ref   : [3, Kp]   f32   block-banded freqs: f_ref[c, c*nfb + k] = freq[k]
    ws_ref  : [Kp, TN]  bf16  sin-feature weight columns  j*TN:(j+1)*TN
    wc_ref  : [Kp, TN]  bf16  cos-feature weight columns
    b_ref   : [1, TN]   f32   bias columns
    o_ref   : [TM, TN]  f32   output tile (lane-dense)
    sin_scr : [TM, Kp]  bf16  cached sin features (written at j == 0)
    cos_scr : [TM, Kp]  bf16  cached cos features (written at j == 0)
    """
    @pl.when(pl.program_id(1) == 0)
    def _():
        pos = pos_ref[...]                              # [TM, 3]
        f = f_ref[...]                                  # [3, Kp]
        # ang = pos @ F with F block-banded, evaluated as 3 rank-1 VPU outer
        # products -> exact f32 angles, lane-contiguous [TM, Kp] slab.
        ang = (pos[:, 0:1] * f[0:1, :]
               + pos[:, 1:2] * f[1:2, :]
               + pos[:, 2:3] * f[2:3, :])               # [TM, Kp] f32
        sin_scr[...] = jnp.sin(ang).astype(sin_scr.dtype)
        cos_scr[...] = jnp.cos(ang).astype(cos_scr.dtype)

    # Padded angle lanes are 0 -> sin = 0 (harmless) and cos = 1, which hits
    # the zero-padded rows of W_cos -> contributes 0.  Keep the pads zero.
    y = jnp.dot(sin_scr[...], ws_ref[...], preferred_element_type=jnp.float32)
    y = y + jnp.dot(cos_scr[...], wc_ref[...], preferred_element_type=jnp.float32)
    o_ref[...] = y + b_ref[...]                         # bias add in f32


# ------------------------------- Wrapper -----------------------------------

def init_pos_encoder_3d(key, hidden_dim, max_freq=10.0, *,
                        weight_dtype=jnp.bfloat16, lane=128):
    """Parameter init. All splitting / padding / casting is hoisted here."""
    # nn.Linear(hidden_dim // 6 * 6, hidden_dim): in_features = 6 * (H // 6).
    assert hidden_dim >= 6, "hidden_dim must be >= 6 (uses hidden_dim // 6 bands)"
    nfb = hidden_dim // 6
    in_dim = 6 * nfb
    h_pad = _round_up(hidden_dim, lane)
    k_pad = _round_up(3 * nfb, lane)

    kw, kb = jax.random.split(key)
    bound = 1.0 / math.sqrt(in_dim)                     # nn.Linear default init
    w = jax.random.uniform(kw, (in_dim, hidden_dim), jnp.float32, -bound, bound)
    b = jax.random.uniform(kb, (hidden_dim,), jnp.float32, -bound, bound)

    # PyTorch feature order is [sin_x, cos_x, sin_y, cos_y, sin_z, cos_z];
    # regroup weight rows into one sin block and one cos block (x, y, z order).
    w3 = w.reshape(3, 2, nfb, hidden_dim)
    w_sin = w3[:, 0, :, :].reshape(3 * nfb, hidden_dim)
    w_cos = w3[:, 1, :, :].reshape(3 * nfb, hidden_dim)

    # Zero padding matters: padded angle lanes give cos(0) = 1, so the padded
    # rows of w_cos_pad (and w_sin_pad) MUST stay zero.  Bias pad stays zero
    # so padded output columns are exactly zero.
    w_sin_pad = (jnp.zeros((k_pad, h_pad), jnp.float32)
                 .at[:3 * nfb, :hidden_dim].set(w_sin).astype(weight_dtype))
    w_cos_pad = (jnp.zeros((k_pad, h_pad), jnp.float32)
                 .at[:3 * nfb, :hidden_dim].set(w_cos).astype(weight_dtype))
    b_pad = jnp.zeros((1, h_pad), jnp.float32).at[0, :hidden_dim].set(b)

    freq = jnp.linspace(0.0, max_freq, nfb, dtype=jnp.float32)
    f_rows = jnp.zeros((3, k_pad), jnp.float32)
    for c in range(3):
        f_rows = f_rows.at[c, c * nfb:(c + 1) * nfb].set(freq)

    return {
        "hidden_dim": hidden_dim, "h_pad": h_pad, "k_pad": k_pad, "nfb": nfb,
        "w": w, "b": b, "freq": freq.reshape(1, nfb),     # reference copies
        "w_sin_pad": w_sin_pad, "w_cos_pad": w_cos_pad,   # kernel-ready
        "b_pad": b_pad, "f_rows": f_rows,
    }


def _choose_row_tile(n, h_pad):
    """~1 MiB of f32 output per grid step, >= 2 row tiles when work is large."""
    tile_m = max(8, min(4096, (1 << 20) // (h_pad * 4)))
    tile_m = _round_up(tile_m, 8)
    n_rows = _round_up(max(n, 8), 8)
    if n_rows <= tile_m:
        tile_m = n_rows                                   # single step
    if n_rows >= 2048:                                    # v7x megacore: >= 2 tiles
        tile_m = min(tile_m, _round_up(-(-n_rows // 2), 8))
    n_pad = _round_up(n_rows, tile_m)
    return tile_m, n_pad


def _choose_col_tile(h_pad, k_pad, w_bytes):
    """Largest column tile whose double-buffered W_sin+W_cos blocks fit ~16 MiB."""
    budget = 16 << 20
    for tn in (h_pad, 2048, 1024, 512, 256, 128):
        if tn <= h_pad and h_pad % tn == 0 and 4 * k_pad * tn * w_bytes <= budget:
            return tn
    return 128


def pos_encoder_3d(params, pos):
    """pos: [N, 3] -> [N, hidden_dim].  Single fused pallas_call."""
    n = pos.shape[0]
    h = params["hidden_dim"]
    hp = params["h_pad"]
    kp = params["k_pad"]

    w_dtype = params["w_sin_pad"].dtype
    w_bytes = jnp.dtype(w_dtype).itemsize

    tile_m, n_pad = _choose_row_tile(n, hp)
    tn = _choose_col_tile(hp, kp, w_bytes)
    grid = (n_pad // tile_m, hp // tn)

    pos32 = pos.astype(jnp.float32)
    if n_pad != n:
        pos32 = jnp.pad(pos32, ((0, n_pad - n), (0, 0)))

    # Explicit scoped-VMEM budget (defaults: 16 MiB v5e / 32 MiB v6e,v7x).
    need = (2 * tile_m * 128 * 4            # pos block (lane-padded), 2 buffers
            + 2 * 8 * kp * 4                # F rows
            + 4 * kp * tn * w_bytes         # W_sin + W_cos blocks, 2 buffers
            + 2 * 8 * tn * 4                # bias
            + 2 * tile_m * tn * 4           # output block, 2 buffers
            + 2 * tile_m * kp * w_bytes)    # sin/cos feature scratch
    vmem_limit = int(min(max(2 * need, 16 << 20), 64 << 20))

    out = pl.pallas_call(
        _pe3d_kernel,
        grid=grid,
        out_shape=jax.ShapeDtypeStruct((n_pad, hp), jnp.float32),
        in_specs=[
            pl.BlockSpec((tile_m, 3), lambda i, j: (i, 0)),   # pos rows
            pl.BlockSpec((3, kp), lambda i, j: (0, 0)),       # block-banded freqs
            pl.BlockSpec((kp, tn), lambda i, j: (0, j)),      # W_sin columns
            pl.BlockSpec((kp, tn), lambda i, j: (0, j)),      # W_cos columns
            pl.BlockSpec((1, tn), lambda i, j: (0, j)),       # bias columns
        ],
        out_specs=pl.BlockSpec((tile_m, tn), lambda i, j: (i, j)),
        scratch_shapes=[
            pltpu.VMEM((tile_m, kp), w_dtype),                # cached sin features
            pltpu.VMEM((tile_m, kp), w_dtype),                # cached cos features
        ],
        compiler_params=pltpu.CompilerParams(
            dimension_semantics=("parallel", "arbitrary"),
            vmem_limit_bytes=vmem_limit),
    )(pos32, params["f_rows"], params["w_sin_pad"], params["w_cos_pad"],
      params["b_pad"])

    if n_pad == n and hp == h:
        return out                                       # no padded-slice copy
    return out[:n, :h]


# ---------------------------- Pure-JAX references ----------------------------

def pos_encoder_3d_ref(params, pos):
    """f32 reference matching the PyTorch module math."""
    freq = params["freq"]
    encs = []
    for i in range(3):
        ang = pos[:, i:i + 1] * freq
        encs.append(jnp.sin(ang))
        encs.append(jnp.cos(ang))
    feat = jnp.concatenate(encs, axis=1)
    return feat @ params["w"] + params["b"]


def pos_encoder_3d_ref_bf16(params, pos):
    """Reference with the same bf16 feature/weight quantization as the kernel."""
    freq = params["freq"]
    encs = []
    for i in range(3):
        ang = pos[:, i:i + 1] * freq
        encs.append(jnp.sin(ang))
        encs.append(jnp.cos(ang))
    feat = jnp.concatenate(encs, axis=1).astype(jnp.bfloat16)
    w = params["w"].astype(jnp.bfloat16)
    return jnp.dot(feat, w, preferred_element_type=jnp.float32) + params["b"]


# ---------------------------------- Main ------------------------------------

if __name__ == "__main__":
    key = jax.random.PRNGKey(0)
    k_pos, k_param = jax.random.split(key)

    N, hidden_dim = 16, 32                              # 16 points, hidden 32
    pos = jax.random.normal(k_pos, (N, 3), jnp.float32)
    params = init_pos_encoder_3d(k_param, hidden_dim, max_freq=10.0)

    out = jax.block_until_ready(pos_encoder_3d(params, pos))

    assert out.shape == (N, hidden_dim), out.shape
    assert bool(jnp.all(jnp.isfinite(out)))

    ref_q = pos_encoder_3d_ref_bf16(params, pos)        # bf16-matched reference
    err_q = float(jnp.max(jnp.abs(out - ref_q)))
    assert err_q < 1e-2, f"mismatch vs bf16-matched reference: {err_q}"

    ref = pos_encoder_3d_ref(params, pos)               # f32 (PyTorch) reference
    err = float(jnp.max(jnp.abs(out - ref)))
    assert err < 5e-2, f"mismatch vs f32 reference: {err}"

    print("KERNEL_OK")
</pallas_src>

<mosaic_0001>
module attributes {stable_mosaic.version = 11 : i64} {
  func.func @_pe3d_kernel(%arg0: i32, %arg1: i32, %arg2: memref<16x3xf32, #tpu.memory_space<vmem>>, %arg3: memref<3x128xf32, #tpu.memory_space<vmem>>, %arg4: memref<128x128xbf16, #tpu.memory_space<vmem>>, %arg5: memref<128x128xbf16, #tpu.memory_space<vmem>>, %arg6: memref<1x128xf32, #tpu.memory_space<vmem>>, %arg7: memref<16x128xf32, #tpu.memory_space<vmem>>, %arg8: memref<16x128xbf16, #tpu.memory_space<vmem>>, %arg9: memref<16x128xbf16, #tpu.memory_space<vmem>>) attributes {dimension_semantics = [#tpu.dimension_semantics<parallel>, #tpu.dimension_semantics<arbitrary>], iteration_bounds = array<i64: 1, 1>, scalar_prefetch = 0 : i64, scratch_operands = 2 : i64, tpu.core_type = #tpu.core_type<tc>, window_params = [{transform_indices = @transform_0, window_bounds = array<i64: 16, 3>}, {pipeline_mode = #tpu.pipeline_mode<synchronous>, transform_indices = @transform_1, window_bounds = array<i64: 3, 128>}, {transform_indices = @transform_2, window_bounds = array<i64: 128, 128>}, {transform_indices = @transform_3, window_bounds = array<i64: 128, 128>}, {transform_indices = @transform_4, window_bounds = array<i64: 1, 128>}, {transform_indices = @transform_5, window_bounds = array<i64: 16, 128>}]} {
    %c0_i32 = arith.constant 0 : i32
    %0 = arith.cmpi eq, %arg1, %c0_i32 : i32
    %1 = arith.extui %0 : i1 to i32
    %c0_i32_0 = arith.constant 0 : i32
    %2 = arith.cmpi ne, %1, %c0_i32_0 : i32
    scf.if %2 {
      %c0_13 = arith.constant 0 : index
      %c0_14 = arith.constant 0 : index
      %14 = vector.load %arg2[%c0_13, %c0_14] : memref<16x3xf32, #tpu.memory_space<vmem>>, vector<16x3xf32>
      %c0_15 = arith.constant 0 : index
      %c0_16 = arith.constant 0 : index
      %15 = vector.load %arg3[%c0_15, %c0_16] : memref<3x128xf32, #tpu.memory_space<vmem>>, vector<3x128xf32>
      %16 = vector.extract_strided_slice %14 {offsets = [0, 0], sizes = [16, 1], strides = [1, 1]} : vector<16x3xf32> to vector<16x1xf32>
      %17 = vector.extract_strided_slice %15 {offsets = [0, 0], sizes = [1, 128], strides = [1, 1]} : vector<3x128xf32> to vector<1x128xf32>
      %18 = vector.broadcast %16 : vector<16x1xf32> to vector<16x128xf32>
      %19 = vector.broadcast %17 : vector<1x128xf32> to vector<16x128xf32>
      %20 = arith.mulf %18, %19 : vector<16x128xf32>
      %21 = vector.extract_strided_slice %14 {offsets = [0, 1], sizes = [16, 1], strides = [1, 1]} : vector<16x3xf32> to vector<16x1xf32>
      %22 = vector.extract_strided_slice %15 {offsets = [1, 0], sizes = [1, 128], strides = [1, 1]} : vector<3x128xf32> to vector<1x128xf32>
      %23 = vector.broadcast %21 : vector<16x1xf32> to vector<16x128xf32>
      %24 = vector.broadcast %22 : vector<1x128xf32> to vector<16x128xf32>
      %25 = arith.mulf %23, %24 : vector<16x128xf32>
      %26 = arith.addf %20, %25 : vector<16x128xf32>
      %27 = vector.extract_strided_slice %14 {offsets = [0, 2], sizes = [16, 1], strides = [1, 1]} : vector<16x3xf32> to vector<16x1xf32>
      %28 = vector.extract_strided_slice %15 {offsets = [2, 0], sizes = [1, 128], strides = [1, 1]} : vector<3x128xf32> to vector<1x128xf32>
      %29 = vector.broadcast %27 : vector<16x1xf32> to vector<16x128xf32>
      %30 = vector.broadcast %28 : vector<1x128xf32> to vector<16x128xf32>
      %31 = arith.mulf %29, %30 : vector<16x128xf32>
      %32 = arith.addf %26, %31 : vector<16x128xf32>
      %33 = math.sin %32 : vector<16x128xf32>
      %34 = arith.truncf %33 : vector<16x128xf32> to vector<16x128xbf16>
      %c0_17 = arith.constant 0 : index
      %c0_18 = arith.constant 0 : index
      %35 = vector.load %arg8[%c0_17, %c0_18] : memref<16x128xbf16, #tpu.memory_space<vmem>>, vector<16x128xbf16>
      tpu.vector_store %arg8[%c0_17, %c0_18], %34 {strides = array<i32>} : memref<16x128xbf16, #tpu.memory_space<vmem>>, vector<16x128xbf16>,
      %36 = math.cos %32 : vector<16x128xf32>
      %37 = arith.truncf %36 : vector<16x128xf32> to vector<16x128xbf16>
      %c0_19 = arith.constant 0 : index
      %c0_20 = arith.constant 0 : index
      %38 = vector.load %arg9[%c0_19, %c0_20] : memref<16x128xbf16, #tpu.memory_space<vmem>>, vector<16x128xbf16>
      tpu.vector_store %arg9[%c0_19, %c0_20], %37 {strides = array<i32>} : memref<16x128xbf16, #tpu.memory_space<vmem>>, vector<16x128xbf16>,
    } else {
    }
    %c0 = arith.constant 0 : index
    %c0_1 = arith.constant 0 : index
    %3 = vector.load %arg8[%c0, %c0_1] : memref<16x128xbf16, #tpu.memory_space<vmem>>, vector<16x128xbf16>
    %c0_2 = arith.constant 0 : index
    %c0_3 = arith.constant 0 : index
    %4 = vector.load %arg4[%c0_2, %c0_3] : memref<128x128xbf16, #tpu.memory_space<vmem>>, vector<128x128xbf16>
    %cst = arith.constant dense<0.000000e+00> : vector<16x128xf32>
    %5 = tpu.matmul %3, %4, %cst {dimension_numbers = #tpu.dot_dimension_numbers<[1], [0], [0], [1], [0, 0, 1, 1], [], []>} : vector<16x128xbf16>, vector<128x128xbf16>, vector<16x128xf32> -> vector<16x128xf32>
    %c0_4 = arith.constant 0 : index
    %c0_5 = arith.constant 0 : index
    %6 = vector.load %arg9[%c0_4, %c0_5] : memref<16x128xbf16, #tpu.memory_space<vmem>>, vector<16x128xbf16>
    %c0_6 = arith.constant 0 : index
    %c0_7 = arith.constant 0 : index
    %7 = vector.load %arg5[%c0_6, %c0_7] : memref<128x128xbf16, #tpu.memory_space<vmem>>, vector<128x128xbf16>
    %cst_8 = arith.constant dense<0.000000e+00> : vector<16x128xf32>
    %8 = tpu.matmul %6, %7, %cst_8 {dimension_numbers = #tpu.dot_dimension_numbers<[1], [0], [0], [1], [0, 0, 1, 1], [], []>} : vector<16x128xbf16>, vector<128x128xbf16>, vector<16x128xf32> -> vector<16x128xf32>
    %9 = arith.addf %5, %8 : vector<16x128xf32>
    %c0_9 = arith.constant 0 : index
    %c0_10 = arith.constant 0 : index
    %10 = vector.load %arg6[%c0_9, %c0_10] : memref<1x128xf32, #tpu.memory_space<vmem>>, vector<1x128xf32>
    %11 = vector.broadcast %10 : vector<1x128xf32> to vector<16x128xf32>
    %12 = arith.addf %9, %11 : vector<16x128xf32>
    %c0_11 = arith.constant 0 : index
    %c0_12 = arith.constant 0 : index
    %13 = vector.load %arg7[%c0_11, %c0_12] : memref<16x128xf32, #tpu.memory_space<vmem>>, vector<16x128xf32>
    tpu.vector_store %arg7[%c0_11, %c0_12], %12 {strides = array<i32>} : memref<16x128xf32, #tpu.memory_space<vmem>>, vector<16x128xf32>,
    return
  }
  func.func @transform_0(%arg0: i32, %arg1: i32) -> (i32, i32) {
    %c0_i32 = arith.constant 0 : i32
    %c0_i32_0 = arith.constant 0 : i32
    return %arg0, %c0_i32 : i32, i32
  }
  func.func @transform_1(%arg0: i32, %arg1: i32) -> (i32, i32) {
    %c0_i32 = arith.constant 0 : i32
    %c0_i32_0 = arith.constant 0 : i32
    %c0_i32_1 = arith.constant 0 : i32
    return %c0_i32, %c0_i32_0 : i32, i32
  }
  func.func @transform_2(%arg0: i32, %arg1: i32) -> (i32, i32) {
    %c0_i32 = arith.constant 0 : i32
    %c0_i32_0 = arith.constant 0 : i32
    return %c0_i32, %arg1 : i32, i32
  }
  func.func @transform_3(%arg0: i32, %arg1: i32) -> (i32, i32) {
    %c0_i32 = arith.constant 0 : i32
    %c0_i32_0 = arith.constant 0 : i32
    return %c0_i32, %arg1 : i32, i32
  }
  func.func @transform_4(%arg0: i32, %arg1: i32) -> (i32, i32) {
    %c0_i32 = arith.constant 0 : i32
    %c0_i32_0 = arith.constant 0 : i32
    return %c0_i32, %arg1 : i32, i32
  }
  func.func @transform_5(%arg0: i32, %arg1: i32) -> (i32, i32) {
    %c0_i32 = arith.constant 0 : i32
    return %arg0, %arg1 : i32, i32
  }
}

</mosaic_0001>

<bundles_post_ra>
// kernel: tpu_custom_call.1
= control target key start
LH: loop header
LB: loop body
LE: loop exit
PB: predicated region body
PF: predicated region fallthrough
CT: control target
= control target key end

     0   :  { %10 = vsyncpa [#allocation5], 0  ;;  %s1144_s0 = inlined_call_operand.vmem [shape: f32[16,3], index: 0, kind: input, shape index: {}]   ;;  %s1145_s1 = inlined_call_operand.vmem [shape: f32[3,128], index: 1, kind: input, shape index: {}]   ;;  %s1146_s2 = inlined_call_operand.hbm [shape: bf16[128,128], index: 2, kind: input, shape index: {}]   ;;  %s1147_s3 = inlined_call_operand.hbm [shape: bf16[128,128], index: 3, kind: input, shape index: {}]   ;;  %s1148_s4 = inlined_call_operand.vmem [shape: f32[1,128], index: 4, kind: input, shape index: {}]   ;;  %s1149_s5 = inlined_call_operand.hbm [shape: f32[16,128], index: 5, kind: output, shape index: {}]  }
   0x1   :  { %11 = vsyncpa [#allocation8], 0 }
   0x2   :  { %12 = vsyncpa [#allocation6], 0  ;;  %s981_s18 = smov [#allocation4]   ;;  %s909_s22 = scalar_lea.hbm %s1146_s2, 1024 }
   0x3   :  { %s22_s19 = sshll.u32 %s981_s18, 4  ;;  %p910_p0 = scmp.ne.s32.totalorder %s1146_s2, %s909_s22  ;;  %s23_s19 = int_to_ptr.vmem [resolvable:$true] %s22_s19 }
   0x4   :  { %p913_p1 = scmp.lt.u32.totalorder %s909_s22, %s1146_s2 }
   0x6   :  { %p915_p2 = pnand %p913_p1, %p910_p0 }
   0x8   :  { %918 = shalt.err (!%p915_p2)
}
   0x9   :  { %s919_s27 = scalar_lea.vmem %s23_s19, 1024  ;;  %p924_p4 = scmp.lt.s32.totalorder %s23_s19, %s23_s19 }
   0xa   :  { %p920_p3 = scmp.ne.s32.totalorder %s23_s19, %s919_s27  ;;  %p925_p5 = scmp.lt.s32.totalorder %s919_s27, %s919_s27 }
   0xc   :  { %p926_p6 = por %p925_p5, %p924_p4 }
   0xe   :  { %p927_p7 = pnand %p926_p6, %p920_p3 }
  0x10   :  { %930 = shalt.err (!%p927_p7)
}
  0x11   :  { %s982_s28 = smov 64   ;;  %s983_s29 = smov 4  }
  0x12   :  { %28 = dma.hbm_to_vmem [thread:$0]  %s1146_s2, 1024, %s23_s19, [#allocation5], %s982_s28, %s982_s28, %s983_s29  }
  0x13   :  { %s984_s7 = smov [#allocation7]   ;;  %s931_s11 = scalar_lea.hbm %s1147_s3, 1024 }
  0x14   :  { %s34_s8 = sshll.u32 %s984_s7, 4  ;;  %p932_p8 = scmp.ne.s32.totalorder %s1147_s3, %s931_s11  ;;  %s35_s8 = int_to_ptr.vmem [resolvable:$true] %s34_s8 }
  0x15   :  { %p935_p9 = scmp.lt.u32.totalorder %s931_s11, %s1147_s3 }
  0x17   :  { %p937_p10 = pnand %p935_p9, %p932_p8 }
  0x19   :  { %940 = shalt.err (!%p937_p10)
}
  0x1a   :  { %s941_s16 = scalar_lea.vmem %s35_s8, 1024  ;;  %p946_p12 = scmp.lt.s32.totalorder %s35_s8, %s35_s8 }
  0x1b   :  { %p942_p11 = scmp.ne.s32.totalorder %s35_s8, %s941_s16  ;;  %p947_p13 = scmp.lt.s32.totalorder %s941_s16, %s941_s16 }
  0x1d   :  { %p948_p0 = por %p947_p13, %p946_p12 }
  0x1f   :  { %p949_p1 = pnand %p948_p0, %p942_p11 }
  0x21   :  { %952 = shalt.err (!%p949_p1)
}
  0x22   :  { %40 = dma.hbm_to_vmem [thread:$0]  %s1147_s3, 1024, %s35_s8, [#allocation8], %s982_s28, %s982_s28, %s983_s29  }
  0x23   :  { %975 = dma.done.wait [#allocation5], 1024  }
  0x24   :  { %976 = vsyncadd [#allocation5], 4294966272 }
  0x25   :  { %977 = dma.done.wait [#allocation8], 1024  }
  0x26   :  { %978 = vsyncadd [#allocation8], 4294966272  ;;  %v985_v0 = vmov 1   ;;  %v986_v1 = vmov 0   ;;  %v54_v2 = vld [vmem:[%s1144_s0] sm:$0xff]  ;;  %v55_v3 = vld [vmem:[%s1144_s0 + $0x8] sm:$0xff]  ;;  %v67_v22 = vlaneseq }
  0x27   :  { %882 = vset.pattern.permute.xlu1 %v985_v0  ;;  %881 = vset.pattern.permute.xlu0 %v986_v1  ;;  %v987_v4 = vmov 2   ;;  %v885_v5 = vld [vmem:[#allocation7] sm:$0xff]   ;;  %v988_v7 = vmov 0.0   ;;  %v887_v8 = vld [vmem:[#allocation7 + $0x8] sm:$0xff]   ;;  %v889_v10 = vld [vmem:[#allocation7 + $0x10] sm:$0xff]   ;;  %vm989_vm0 = vmmov 0  }
  0x28   :  { %74 = vperm.xlu1 %882, %v54_v2   ;;  %59 = vperm.xlu0 %881, %v54_v2   ;;  %v886_v6 = vld [vmem:[#allocation4] sm:$0xff]   ;;  %v888_v9 = vld [vmem:[#allocation4 + $0x8] sm:$0xff]   ;;  %v890_v11 = vld [vmem:[#allocation4 + $0x10] sm:$0xff]   ;;  %v68_v23 = vshrl.u32 %v67_v22, 7  ;;  %s996_s23 = smov [#allocation9]  }
  0x29   :  { %815 = vmatprep.subr.bf16.mxu0 %v988_v7  ;;  %835 = vmatprep.subr.bf16.mxu1 %v988_v7  ;;  %v891_v12 = vld [vmem:[#allocation7 + $0x18] sm:$0xff]   ;;  %v893_v14 = vld [vmem:[#allocation7 + $0x20] sm:$0xff]   ;;  %v895_v16 = vld [vmem:[#allocation7 + $0x28] sm:$0xff]   ;;  %s751_s24 = sshll.u32 %s996_s23, 4  ;;  %s752_s24 = int_to_ptr.vmem [resolvable:$true] %s751_s24 }
  0x2a   :  { %816 = vmatpush3.bf16.msra.mxu0 %v885_v5  ;;  %836 = vmatpush3.bf16.msra.mxu1 %v886_v6  ;;  %v892_v13 = vld [vmem:[#allocation4 + $0x18] sm:$0xff]   ;;  %v894_v15 = vld [vmem:[#allocation4 + $0x20] sm:$0xff]   ;;  %v896_v17 = vld [vmem:[#allocation4 + $0x28] sm:$0xff]   ;;  %v83_v24 = vsub.s32 1, %v68_v23  ;;  %v69_v25 = vsub.s32 0, %v68_v23  ;;  %v99_v29 = vsub.s32 2, %v68_v23  ;;  %p958_p3 = scmp.lt.s32.totalorder %s752_s24, %s752_s24 }
  0x2b   :  { %817 = vmatprep.subr.bf16.mxu0 %v988_v7  ;;  %837 = vmatprep.subr.bf16.mxu1 %v988_v7  ;;  %v897_v18 = vld [vmem:[#allocation7 + $0x30] sm:$0xff]   ;;  %v899_v20 = vld [vmem:[#allocation7 + $0x38] sm:$0xff]   ;;  %v56_v26 = vld [vmem:[%s1145_s1] sm:$0x7]  ;;  %s953_s25 = scalar_lea.vmem %s752_s24, 256 }
  0x2c   :  { %78 = vperm.xlu1 %882, %v55_v3   ;;  %64 = vperm.xlu0 %881, %v55_v3   ;;  %v898_v19 = vld [vmem:[#allocation4 + $0x30] sm:$0xff]   ;;  %v900_v21 = vld [vmem:[#allocation4 + $0x38] sm:$0xff]   ;;  %v84_v30 = vrot.slane %v56_v26, %v83_v24  ;;  %v70_v31 = vrot.slane %v56_v26, %v69_v25  ;;  %v100_v34 = vrot.slane %v56_v26, %v99_v29  ;;  %p954_p2 = scmp.ne.s32.totalorder %s752_s24, %s953_s25  ;;  %p959_p4 = scmp.lt.s32.totalorder %s953_s25, %s953_s25 }
  0x2d   :  { %831 = vmatprep.mubr.msk.bf16.mxu0 %vm989_vm0, %v988_v7  ;;  %851 = vmatprep.mubr.msk.bf16.mxu1 %vm989_vm0, %v988_v7 }
  0x2e   :  { %818 = vmatpush3.bf16.msra.mxu0 %v887_v8  ;;  %838 = vmatpush3.bf16.msra.mxu1 %v888_v9  ;;  %v992_v9 = vmov 2131351028   ;;  %p960_p5 = por %p959_p4, %p958_p3 }
  0x2f   :  { %819 = vmatprep.subr.bf16.mxu0 %v988_v7  ;;  %839 = vmatprep.subr.bf16.mxu1 %v988_v7 }
  0x30   :  { %884 = vset.pattern.permute.xlu1 %v987_v4  ;;  %883 = vset.pattern.permute.xlu0 %v987_v4  ;;  %p961_p6 = pnand %p960_p5, %p954_p2 }
  0x31   :  { %94 = vperm.xlu1 %884, %v55_v3   ;;  %90 = vperm.xlu0 %883, %v54_v2   ;;  %v990_v3 = vmov 683565275  }
  0x32   :  { %820 = vmatpush3.bf16.msra.mxu0 %v889_v10  ;;  %840 = vmatpush3.bf16.msra.mxu1 %v890_v11  ;;  %v993_v11 = vmov 2102212464  }
  0x33   :  { %821 = vmatprep.subr.bf16.mxu0 %v988_v7  ;;  %841 = vmatprep.subr.bf16.mxu1 %v988_v7 }
  0x36   :  { %822 = vmatpush3.bf16.msra.mxu0 %v891_v12  ;;  %842 = vmatpush3.bf16.msra.mxu1 %v892_v13  ;;  %v994_v13 = vmov 920167782  }
  0x37   :  { %823 = vmatprep.subr.bf16.mxu0 %v988_v7  ;;  %843 = vmatprep.subr.bf16.mxu1 %v988_v7 }
  0x3a   :  { %824 = vmatpush3.bf16.msra.mxu0 %v893_v14  ;;  %844 = vmatpush3.bf16.msra.mxu1 %v894_v15 }
  0x3b   :  { %825 = vmatprep.subr.bf16.mxu0 %v988_v7  ;;  %845 = vmatprep.subr.bf16.mxu1 %v988_v7 }
  0x3e   :  { %826 = vmatpush3.bf16.msra.mxu0 %v895_v16  ;;  %846 = vmatpush3.bf16.msra.mxu1 %v896_v17 }
  0x3f   :  { %827 = vmatprep.subr.bf16.mxu0 %v988_v7  ;;  %847 = vmatprep.subr.bf16.mxu1 %v988_v7 }
  0x42   :  { %828 = vmatpush3.bf16.msra.mxu0 %v897_v18  ;;  %848 = vmatpush3.bf16.msra.mxu1 %v898_v19 }
  0x43   :  { %829 = vmatprep.subr.bf16.mxu0 %v988_v7  ;;  %849 = vmatprep.subr.bf16.mxu1 %v988_v7  ;;  %v991_v7 = vmov 2475754826  }
  0x46   :  { %830 = vmatpush3.bf16.msra.mxu0 %v899_v20  ;;  %850 = vmatpush3.bf16.msra.mxu1 %v900_v21  ;;  %v995_v20 = vmov 1326507024  }
  0xa7   :  { %v75_v27 = vpop.permute.xlu1 %74  ;;  %v60_v28 = vpop.permute.xlu0 %59 }
  0xa8   :  { %v85_v35 = vmul.f32 %v84_v30, %v75_v27  ;;  %v71_v36 = vmul.f32 %v70_v31, %v60_v28 }
  0xaa   :  { %v87_v41 = vadd.f32 %v85_v35, %v71_v36 }
  0xab   :  { %v79_v32 = vpop.permute.xlu1 %78  ;;  %v65_v33 = vpop.permute.xlu0 %64 }
  0xac   :  { %v86_v37 = vmul.f32 %v84_v30, %v79_v32  ;;  %v72_v38 = vmul.f32 %v70_v31, %v65_v33 }
  0xae   :  { %v88_v42 = vadd.f32 %v86_v37, %v72_v38 }
  0xb0   :  { %v95_v39 = vpop.permute.xlu1 %94  ;;  %v91_v40 = vpop.permute.xlu0 %90 }
  0xb1   :  { %v102_v43 = vmul.f32 %v100_v34, %v95_v39  ;;  %v101_v44 = vmul.f32 %v100_v34, %v91_v40 }
  0xb3   :  { %v1062_v45 = vadd.f32 %v102_v43, %v88_v42  ;;  %v1064_v46 = vadd.f32 %v101_v44, %v87_v41 }
  0xb5   :  { %v209_v47 = vand.u32 2147483647, %v1062_v45  ;;  %v212_v48 = vand.u32 2139095040, %v1062_v45  ;;  %v108_v49 = vand.u32 2139095040, %v1064_v46  ;;  %v105_v52 = vand.u32 2147483647, %v1064_v46 }
  0xb6   :  { %vm211_vm15 = vcmp.lt.s32.totalorder %v1062_v45, 0 }
  0xb7   :  { %v213_v50 = vshrl.u32 %v212_v48, 23  ;;  %v216_v51 = vand.u32 8388607, %v209_v47  ;;  %v109_v53 = vshrl.u32 %v108_v49, 23  ;;  %v1074_v58 = vand.u32 8388607, %v105_v52 }
  0xb8   :  { %vm210_vm0 = vcmp.le.f32.partialorder %v209_v47, 0.7853982 }
  0xb9   :  { %v768_v54 = vadd.s32 4294967169, %v213_v50  ;;  %v764_v55 = vadd.s32 4294967169, %v109_v53  ;;  %v217_v57 = vor.u32 8388608, %v216_v51  ;;  %v113_v1 = vor.u32 8388608, %v1074_v58 }
  0xbb   :  { %v219_v56 = vadd.s32 1, %v768_v54  ;;  %v115_v59 = vadd.s32 1, %v764_v55  ;;  %v1076_v0 = vshll.u32 %v217_v57, 8 }
  0xbd   :  { %vm220_vm1 = vcmp.gt.s32.totalorder %v219_v56, 0  ;;  %vm116_vm2 = vcmp.gt.s32.totalorder %v115_v59, 0 }
  0xbe   :  { %v221_v60 = vsel %vm220_vm1, %v219_v56, 0  ;;  %v117_v63 = vsel %vm116_vm2, %v115_v59, 0  ;;  %v153_v59 = vshll.u32 %v113_v1, 8  ;;  %vm107_vm1 = vcmp.lt.s32.totalorder %v1064_v46, 0 }
  0xbf   :  { %v222_v61 = vshrl.u32 %v221_v60, 5  ;;  %v223_v62 = vand.u32 31, %v221_v60  ;;  %v1079_v5 = vshrl.u32 %v117_v63, 5  ;;  %v119_v6 = vand.u32 31, %v117_v63 }
  0xc0   :  { %vm106_vm2 = vcmp.le.f32.partialorder %v105_v52, 0.7853982 }
  0xc1   :  { %v224_v2 = vsub.s32 32, %v223_v62  ;;  %v226_v4 = vshll.u32 %v990_v3, %v223_v62  ;;  %v229_v8 = vshll.u32 %v991_v7, %v223_v62  ;;  %v232_v10 = vshll.u32 %v992_v9, %v223_v62 }
  0xc2   :  { %v235_v12 = vshll.u32 %v993_v11, %v223_v62  ;;  %v238_v14 = vshll.u32 %v994_v13, %v223_v62  ;;  %vm241_vm3 = vcmp.lt.s32.totalorder %v222_v61, 1  ;;  %vm242_vm4 = vcmp.lt.s32.totalorder %v222_v61, 2 }
  0xc3   :  { %v227_v15 = vshrl.u32 %v991_v7, %v224_v2  ;;  %v230_v16 = vshrl.u32 %v992_v9, %v224_v2  ;;  %v233_v17 = vshrl.u32 %v993_v11, %v224_v2  ;;  %v225_v18 = vshrl.u32 %v990_v3, %v224_v2 }
  0xc4   :  { %v236_v19 = vshrl.u32 %v994_v13, %v224_v2  ;;  %v239_v21 = vshrl.u32 %v995_v20, %v224_v2  ;;  %v120_v25 = vsub.s32 32, %v119_v6  ;;  %vm243_vm5 = vcmp.lt.s32.totalorder %v222_v61, 3 }
  0xc5   :  { %v228_v22 = vor.u32 %v227_v15, %v226_v4  ;;  %v231_v23 = vor.u32 %v230_v16, %v229_v8  ;;  %v234_v24 = vor.u32 %v233_v17, %v232_v10  ;;  %vm244_vm6 = vcmp.lt.s32.totalorder %v222_v61, 4 }
  0xc6   :  { %v237_v26 = vor.u32 %v236_v19, %v235_v12  ;;  %v240_v27 = vor.u32 %v239_v21, %v238_v14  ;;  %v122_v35 = vshll.u32 %v990_v3, %v119_v6  ;;  %v123_v38 = vshrl.u32 %v991_v7, %v120_v25 }
  0xc7   :  { %v245_v28 = vsel %vm241_vm3, %v225_v18, %v228_v22  ;;  %v246_v29 = vsel %vm244_vm6, %v234_v24, 2102212464  ;;  %v249_v30 = vsel %vm241_vm3, %v228_v22, %v231_v23  ;;  %v253_v31 = vsel %vm241_vm3, %v231_v23, %v234_v24 }
  0xc8   :  { %v247_v32 = vsel %vm243_vm5, %v231_v23, %v246_v29  ;;  %v250_v33 = vsel %vm244_vm6, %v237_v26, 920167782  ;;  %v254_v34 = vsel %vm244_vm6, %v240_v27, 1326507024  ;;  %v125_v39 = vshll.u32 %v991_v7, %v119_v6 }
  0xc9   :  { %v251_v36 = vsel %vm243_vm5, %v234_v24, %v250_v33  ;;  %v255_v37 = vsel %vm243_vm5, %v237_v26, %v254_v34  ;;  %v248_v40 = vsel %vm242_vm4, %v245_v28, %v247_v32  ;;  %v126_v43 = vshrl.u32 %v992_v9, %v120_v25 }
  0xca   :  { %v252_v41 = vsel %vm242_vm4, %v249_v30, %v251_v36  ;;  %v256_v42 = vsel %vm242_vm4, %v253_v31, %v255_v37  ;;  %v124_v51 = vor.u32 %v123_v38, %v122_v35  ;;  %v128_v54 = vshll.u32 %v992_v9, %v119_v6 }
  0xcb   :  { %v1088_v44 = vmul.u32.u64.low %v1076_v0, %v256_v42  ;;  %v1089_v48 = vmul.u32.u64.high %v1076_v0, %v256_v42, %v1088_v44  ;;  %v1092_v49 = vmul.u32.u64.low %v1076_v0, %v252_v41  ;;  %v1093_v50 = vmul.u32.u64.high %v1076_v0, %v252_v41, %v1092_v49 }
  0xcc   :  { %v127_v53 = vor.u32 %v126_v43, %v125_v39  ;;  %v129_v55 = vshrl.u32 %v993_v11, %v120_v25  ;;  %v131_v56 = vshll.u32 %v993_v11, %v119_v6  ;;  %v132_v57 = vshrl.u32 %v994_v13, %v120_v25 }
  0xcd   :  { %v135_v58 = vshrl.u32 %v995_v20, %v120_v25  ;;  %v264_v60 = vmul.u32 %v1076_v0, %v248_v40  ;;  %v121_v61 = vshrl.u32 %v990_v3, %v120_v25  ;;  %v134_v63 = vshll.u32 %v994_v13, %v119_v6 }
  0xce   :  { %v130_v62 = vor.u32 %v129_v55, %v128_v54  ;;  %vm266_vm7 = vc.u32 %v1089_v48, %v1092_v49  ;;  %v267_v2 = vadd.s32 1, %v1093_v50  ;;  %v133_v4 = vor.u32 %v132_v57, %v131_v56 }
  0xcf   :  { %vm137_vm8 = vcmp.lt.s32.totalorder %v1079_v5, 1  ;;  %v136_v7 = vor.u32 %v135_v58, %v134_v63  ;;  %vm139_vm9 = vcmp.lt.s32.totalorder %v1079_v5, 3  ;;  %vm140_vm10 = vcmp.lt.s32.totalorder %v1079_v5, 4 }
  0xd0   :  { %v145_v8 = vsel %vm137_vm8, %v124_v51, %v127_v53  ;;  %v268_v1 = vsel %vm266_vm7, %v267_v2, %v1093_v50  ;;  %v142_v9 = vsel %vm140_vm10, %v130_v62, 2102212464  ;;  %v146_v0 = vsel %vm140_vm10, %v133_v4, 920167782 }
  0xd1   :  { %v149_v3 = vsel %vm137_vm8, %v127_v53, %v130_v62  ;;  %v269_v10 = vadd.s32 %v268_v1, %v264_v60  ;;  %vm138_vm11 = vcmp.lt.s32.totalorder %v1079_v5, 2  ;;  %v147_v6 = vsel %vm139_vm9, %v130_v62, %v146_v0 }
  0xd2   :  { %v150_v11 = vsel %vm140_vm10, %v136_v7, 1326507024  ;;  %v141_v12 = vsel %vm137_vm8, %v121_v61, %v124_v51  ;;  %v143_v13 = vsel %vm139_vm9, %v127_v53, %v142_v9  ;;  %v148_v14 = vsel %vm138_vm11, %v145_v8, %v147_v6 }
  0xd3   :  { %v151_v15 = vsel %vm139_vm9, %v133_v4, %v150_v11  ;;  %v270_v16 = vadd.s32 536870912, %v269_v10  ;;  %v1103_v18 = vmul.u32.u64.low %v153_v59, %v148_v14  ;;  %v1104_v19 = vmul.u32.u64.high %v153_v59, %v148_v14, %v1103_v18 }
  0xd4   :  { %v152_v17 = vsel %vm138_vm11, %v149_v3, %v151_v15  ;;  %v144_v23 = vsel %vm138_vm11, %v141_v12, %v143_v13  ;;  %v265_v39 = vadd.s32 %v1092_v49, %v1089_v48  ;;  %vm301_vm7 = vweird.f32 %v1062_v45 }
  0xd5   :  { %v1106_v20 = vmul.u32.u64.low %v153_v59, %v152_v17  ;;  %v1107_v21 = vmul.u32.u64.high %v153_v59, %v152_v17, %v1106_v20  ;;  %v271_v22 = vshrl.u32 %v270_v16, 30  ;;  %v163_v25 = vadd.s32 1, %v1104_v19 }
  0xd6   :  { %v160_v5 = vmul.u32 %v153_v59, %v144_v23 }
  0xd7   :  { %v272_v24 = vshll.u32 %v271_v22, 30  ;;  %vm162_vm12 = vc.u32 %v1107_v21, %v1103_v18  ;;  %v161_v60 = vadd.s32 %v1103_v18, %v1107_v21  ;;  %v295_v9 = vsub.s32 4, %v271_v22 }
  0xd8   :  { %v164_v27 = vsel %vm162_vm12, %v163_v25, %v1104_v19 }
  0xd9   :  { %v273_v26 = vsub.s32 %v269_v10, %v272_v24  ;;  %v165_v28 = vadd.s32 %v164_v27, %v160_v5  ;;  %v296_v12 = vsel %vm211_vm15, %v295_v9, %v271_v22 }
  0xda   :  { %v298_v15 = vsel %vm210_vm0, 0, %v296_v12 }
  0xdb   :  { %v275_v29 = vsub.s32 0, %v273_v26  ;;  %v166_v30 = vadd.s32 536870912, %v165_v28  ;;  %v302_v18 = vadd.s32 3, %v298_v15  ;;  %v511_v23 = vand.u32 3, %v298_v15 }
  0xdd   :  { %v769_v31 = vmin.u32 %v275_v29, %v273_v26  ;;  %v167_v32 = vshrl.u32 %v166_v30, 30  ;;  %v303_v24 = vand.u32 3, %v302_v18  ;;  %vm513_vm3 = vcmp.eq.s32.totalorder %v511_v23, 0 }
  0xde   :  { %vm516_vm4 = vcmp.eq.s32.totalorder %v511_v23, 2  ;;  %vm512_vm8 = vcmp.lt.s32.totalorder %v511_v23, 2 }
  0xdf   :  { %v277_v33 = vclz %v769_v31  ;;  %v168_v34 = vshll.u32 %v167_v32, 30  ;;  %v191_v11 = vsub.s32 4, %v167_v32  ;;  %vm305_vm5 = vcmp.eq.s32.totalorder %v303_v24, 0 }
  0xe0   :  { %vm308_vm6 = vcmp.eq.s32.totalorder %v303_v24, 2  ;;  %vm304_vm9 = vcmp.lt.s32.totalorder %v303_v24, 2 }
  0xe1   :  { %v770_v35 = vadd.s32 4294967294, %v277_v33  ;;  %v169_v36 = vsub.s32 %v165_v28, %v168_v34  ;;  %v192_v16 = vsel %vm107_vm1, %v191_v11, %v167_v32 }
  0xe2   :  { %v194_v19 = vsel %vm106_vm2, 0, %v192_v16 }
  0xe3   :  { %vm771_vm13 = vcmp.lt.s32.totalorder %v770_v35, 0  ;;  %v171_v38 = vsub.s32 0, %v169_v36  ;;  %v198_v22 = vadd.s32 3, %v194_v19 }
  0xe4   :  { %v280_v37 = vsel %vm771_vm13, 0, %v770_v35 }
  0xe5   :  { %v281_v40 = vsub.s32 32, %v280_v37  ;;  %v285_v41 = vsub.s32 4294967266, %v280_v37  ;;  %v765_v42 = vmin.u32 %v171_v38, %v169_v36  ;;  %v282_v43 = vshll.u32 %v273_v26, %v280_v37 }
  0xe6   :  { %v408_v26 = vand.u32 3, %v194_v19  ;;  %v199_v27 = vand.u32 3, %v198_v22 }
  0xe7   :  { %v283_v44 = vshrl.u32 %v265_v39, %v281_v40  ;;  %v286_v50 = vadd.s32 127, %v285_v41  ;;  %v173_v51 = vclz %v765_v42 }
  0xe8   :  { %vm409_vm10 = vcmp.lt.s32.totalorder %v408_v26, 2  ;;  %vm410_vm11 = vcmp.eq.s32.totalorder %v408_v26, 0  ;;  %vm413_vm12 = vcmp.eq.s32.totalorder %v408_v26, 2  ;;  %vm204_vm13 = vcmp.eq.s32.totalorder %v199_v27, 2 }
  0xe9   :  { %v284_v53 = vor.u32 %v283_v44, %v282_v43  ;;  %v287_v54 = vshll.u32 %v286_v50, 23  ;;  %v766_v55 = vadd.s32 4294967294, %v173_v51 }
  0xeb   :  { %v288_v56 = vor.u32 4788187, %v287_v54  ;;  %vm767_vm14 = vcmp.lt.s32.totalorder %v766_v55, 0  ;;  %v291_v58 = vcvt.s32.f32 %v284_v53 }
  0xec   :  { %v176_v59 = vsel %vm767_vm14, 0, %v766_v55  ;;  %vm200_vm14 = vcmp.lt.s32.totalorder %v199_v27, 2 }
  0xed   :  { %v289_v57 = vand.u32 2147483647, %v288_v56  ;;  %v177_v61 = vsub.s32 32, %v176_v59  ;;  %v181_v62 = vsub.s32 4294967266, %v176_v59  ;;  %v178_v49 = vshll.u32 %v169_v36, %v176_v59 }
  0xef   :  { %v292_v48 = vmul.f32 %v291_v58, %v289_v57  ;;  %v179_v63 = vshrl.u32 %v161_v60, %v177_v61  ;;  %v182_v2 = vadd.s32 127, %v181_v62  ;;  %v796_v57 = vld [vmem:[%s1148_s4] ss:$0 sm:$0xff] }
  0xf1   :  { %v293_v4 = vxor.u32 2147483648, %v292_v48  ;;  %v180_v7 = vor.u32 %v179_v63, %v178_v49  ;;  %v183_v8 = vshll.u32 %v182_v2, 23 }
  0xf3   :  { %v294_v1 = vsel %vm211_vm15, %v293_v4, %v292_v48  ;;  %v184_v0 = vor.u32 4788187, %v183_v8  ;;  %v187_v6 = vcvt.s32.f32 %v180_v7  ;;  %vm201_vm15 = vcmp.eq.s32.totalorder %v199_v27, 0 }
  0xf4   :  { %v297_v3 = vsel %vm210_vm0, %v1062_v45, %v294_v1  ;;  %vm197_vm0 = vweird.f32 %v1064_v46 }
  0xf5   :  { %901 = vcosq.f32 %v297_v3  ;;  %v185_v10 = vand.u32 2147483647, %v184_v0 }
  0xf6   :  { %903 = vsinq.f32 %v297_v3 }
  0xf7   :  { %v188_v13 = vmul.f32 %v187_v6, %v185_v10 }
  0xf9   :  { %v189_v14 = vxor.u32 2147483648, %v188_v13 }
  0xfb   :  { %v190_v17 = vsel %vm107_vm1, %v189_v14, %v188_v13 }
  0xfc   :  { %v193_v47 = vsel %vm106_vm2, %v1064_v46, %v190_v17 }
  0xfd   :  { %905 = vcosq.f32 %v193_v47 }
  0xfe   :  { %907 = vsinq.f32 %v193_v47 }
  0xff   :  { %v902_v20 = vpop.eup %901 }
 0x100   :  { %v904_v21 = vpop.eup %903  ;;  %v309_v5 = vxor.u32 2147483648, %v902_v20 }
 0x101   :  { %v306_v25 = vxor.u32 2147483648, %v904_v21 }
 0x102   :  { %v518_v28 = vsel %vm516_vm4, %v309_v5, %v904_v21  ;;  %v310_v30 = vsel %vm308_vm6, %v309_v5, %v904_v21 }
 0x103   :  { %v515_v52 = vsel %vm513_vm3, %v902_v20, %v306_v25  ;;  %v307_v29 = vsel %vm305_vm5, %v902_v20, %v306_v25 }
 0x104   :  { %v519_v34 = vsel %vm512_vm8, %v515_v52, %v518_v28  ;;  %v311_v35 = vsel %vm304_vm9, %v307_v29, %v310_v30 }
 0x105   :  { %v520_v40 = vsel %vm301_vm7, nan, %v519_v34  ;;  %v312_v42 = vsel %vm301_vm7, nan, %v311_v35 }
 0x107   :  { %v906_v31 = vpop.eup %905 }
 0x108   :  { %v908_v32 = vpop.eup %907  ;;  %v205_v33 = vxor.u32 2147483648, %v906_v31 }
 0x109   :  { %v202_v36 = vxor.u32 2147483648, %v908_v32 }
 0x10a   :  { %v415_v37 = vsel %vm413_vm12, %v205_v33, %v908_v32  ;;  %v206_v38 = vsel %vm204_vm13, %v205_v33, %v908_v32 }
 0x10b   :  { %v412_v39 = vsel %vm410_vm11, %v906_v31, %v202_v36  ;;  %v203_v41 = vsel %vm201_vm15, %v906_v31, %v202_v36 }
 0x10c   :  { %v416_v43 = vsel %vm409_vm10, %v412_v39, %v415_v37  ;;  %v207_v44 = vsel %vm200_vm14, %v203_v41, %v206_v38 }
 0x10d   :  { %v417_v50 = vsel %vm197_vm0, nan, %v416_v43  ;;  %v208_v51 = vsel %vm197_vm0, nan, %v207_v44 }
 0x10e   :  { %v521_v53 = vpack.c.bf16 %v520_v40, %v417_v50  ;;  %v313_v54 = vpack.c.bf16 %v312_v42, %v208_v51 }
 0x110   :  { %832 = vmatmul.mubr.bf16.vlgmr.msra.gmra.mrb[0].mxu0 %v521_v53  ;;  %852 = vmatmul.mubr.bf16.vlgmr.msra.gmra.mrb[0].mxu1 %v313_v54 }
 0x1e3   :  { %v639_v55 = vpop.f32.mrb[0].mxu0  ;;  %v728_v56 = vpop.f32.mrb[0].mxu1 }
 0x1e4   :  { %v729_v58 = vadd.f32 %v728_v56, %v639_v55  ;;  %v833_v45 = vpop.f32.mrb[1].mxu0  ;;  %v853_v59 = vpop.f32.mrb[1].mxu1 }
 0x1e5   :  { %v642_v60 = vpop.f32.mrb[2].mxu0  ;;  %v731_v46 = vpop.f32.mrb[2].mxu1 }
 0x1e6   :  { %v742_v61 = vadd.f32 %v796_v57, %v729_v58  ;;  %v732_v62 = vadd.f32 %v731_v46, %v642_v60  ;;  %v834_v48 = vpop.f32.mrb[3].mxu0  ;;  %v854_v49 = vpop.f32.mrb[3].mxu1 }
 0x1e8   :  { %744 = vst [vmem:[#allocation9] sm:$0xff] %v742_v61  ;;  %v743_v63 = vadd.f32 %v796_v57, %v732_v62 }
 0x1ea   :  { %745 = vst [vmem:[#allocation9 + $0x8] sm:$0xff] %v743_v63 }
 0x1eb   :  { %964 = shalt.err (!%p961_p6)
}
 0x1ec   :  { %s965_s27 = scalar_lea.hbm %s1149_s5, 256 }
 0x1ed   :  { %p966_p7 = scmp.ne.s32.totalorder %s1149_s5, %s965_s27  ;;  %p969_p8 = scmp.lt.u32.totalorder %s965_s27, %s1149_s5 }
 0x1ef   :  { %p971_p9 = pnand %p969_p8, %p966_p7 }
 0x1f1   :  { %974 = shalt.err (!%p971_p9)
}
 0x1f2   :  { %s997_s7 = smov 128   ;;  %s998_s8 = smov 8  }
 0x1f3   :  { %757 = dma.vmem_to_hbm [thread:$0]  %s752_s24, 256, %s1149_s5, [#allocation6], %s997_s7, %s997_s7, %s998_s8  }
 0x1f4   :  { %979 = dma.done.wait [#allocation6], 256  }
 0x1f5   :  { %980 = vsyncadd [#allocation6], 4294967040 }
 0x1f6   :  { %761 = vsyncpa [#allocation5], 1 }
 0x1f7   :  { %762 = vsyncpa [#allocation8], 1 }
 0x1f8   :  { %763 = vsyncpa [#allocation6], 1 }

</bundles_post_ra>
